<compile_context>
chip_gen: v5e
topology: v5e:2x2
jax: 0.10.0
libtpu: 0.0.40
codegen_flags: <defaults>
</compile_context>

<pallas_src>
import functools

import jax
import jax.numpy as jnp
import numpy as np
from jax.experimental import pallas as pl
from jax.experimental.pallas import tpu as pltpu


def _round_up(x: int, m: int) -> int:
    return (x + m - 1) // m * m


# ---------------------------------------------------------------------------
# Pass 1: per-core Gram statistics of x (channel-first):
#   G += x @ x^T   (Cin_p, Cin_p)      s += rowsum(x)   (Cin_p, 1)
# One image per inner grid step; leading grid axis = core split (parallel).
# ---------------------------------------------------------------------------
def _stats_kernel(x_ref, g_ref, s_ref, *, compute_dtype):
    @pl.when(pl.program_id(1) == 0)
    def _():
        g_ref[...] = jnp.zeros_like(g_ref)
        s_ref[...] = jnp.zeros_like(s_ref)

    x = x_ref[0].astype(compute_dtype)                     # (Cin_p, S)
    # MXU: contract the spatial (lane) axis of both operands -> (Cin_p, Cin_p)
    g_ref[0] += jax.lax.dot_general(
        x, x, (((1,), (1,)), ((), ())), preferred_element_type=jnp.float32)
    # Per-channel sum of x (lane reduction; XLU has slack in this HBM-bound op)
    s_ref[0] += jnp.sum(x.astype(jnp.float32), axis=1, keepdims=True)


# ---------------------------------------------------------------------------
# Pass 2: recompute y[n] = W @ x[n] per image and apply the folded BN affine,
# writing the NCHW-layout output block directly.
# ---------------------------------------------------------------------------
def _normalize_kernel(x_ref, w_ref, scale_ref, shift_ref, o_ref, *, compute_dtype):
    x = x_ref[0].astype(compute_dtype)                     # (Cin_p, S)
    y = jnp.dot(w_ref[...], x, preferred_element_type=jnp.float32)  # (Cout_p, S)
    o_ref[0] = (y * scale_ref[...] + shift_ref[...]).astype(o_ref.dtype)


def downsample_branch(x_nchw, conv_w, bn_gamma, bn_beta, *, stride, eps=1e-5,
                      compute_dtype=jnp.bfloat16, out_dtype=jnp.float32):
    """Forward of DownsampleBranch (conv1x1 stride s, no bias + BN2d training).

    x_nchw : (N, Cin, H, W)
    conv_w : (Cout, Cin, 1, 1)
    bn_gamma, bn_beta : (Cout,)
    returns: (N, Cout, Ho, Wo) in out_dtype, Ho = ceil(H/stride).
    """
    n, cin, h, w = x_nchw.shape
    cout = conv_w.shape[0]

    # 1x1 strided conv == spatial subsample + per-pixel channel matmul.
    # The subsample is the single remaining wrapper-side pass over x.
    x_sub = x_nchw[:, :, ::stride, ::stride] if stride > 1 else x_nchw
    ho, wo = x_sub.shape[2], x_sub.shape[3]
    s_len = ho * wo
    m = n * s_len

    # Free (contiguous) flatten of the spatial dims; layout stays channel-first.
    x_flat = x_sub.reshape(n, cin, s_len)

    # Channel padding: Cin is the x sublane dim -> packed-sublane granularity
    # of the compute dtype; Cout is the output sublane dim -> multiple of 8.
    c_itemsize = jnp.dtype(compute_dtype).itemsize
    cin_gran = {4: 8, 2: 16, 1: 32}.get(c_itemsize, 8)
    cin_p = _round_up(cin, cin_gran)
    cout_p = _round_up(cout, 8)
    if cin_p != cin:   # never taken for ResNet channel counts (multiples of 64)
        x_flat = jnp.pad(x_flat, ((0, 0), (0, cin_p - cin), (0, 0)))

    w_mat = conv_w.reshape(cout, cin)                       # free reshape
    w_pad = jnp.pad(w_mat, ((0, cout_p - cout), (0, cin_p - cin))
                    ).astype(compute_dtype)                 # (Cout_p, Cin_p)
    gamma_pad = jnp.pad(bn_gamma.astype(jnp.float32),
                        (0, cout_p - cout)).reshape(cout_p, 1)
    beta_pad = jnp.pad(bn_beta.astype(jnp.float32),
                       (0, cout_p - cout)).reshape(cout_p, 1)

    # Pass-1 core split: 2-way when it divides the batch exactly (v7x megacore);
    # otherwise fall back to a single resident accumulator.
    num_splits = 2 if (n >= 2 and n % 2 == 0) else 1
    n_per = n // num_splits

    # ---- VMEM budget: per-step blocks + in-kernel intermediates, generation
    # aware cap from the physical VMEM size. -------------------------------
    x_itemsize = jnp.dtype(x_flat.dtype).itemsize
    o_itemsize = jnp.dtype(out_dtype).itemsize
    x_blk = cin_p * s_len * x_itemsize
    w_blk = cout_p * cin_p * c_itemsize
    o_blk = cout_p * s_len * o_itemsize
    g_blk = cin_p * cin_p * 4
    pass1_est = (2 * x_blk + 2 * g_blk + 2 * cin_p * 4
                 + cin_p * s_len * c_itemsize + g_blk)       # x cast + gram temp
    pass2_est = (2 * x_blk + 2 * w_blk + 2 * o_blk + 4 * cout_p * 4
                 + cin_p * s_len * c_itemsize + cout_p * s_len * 4)  # x cast + y
    est = max(pass1_est, pass2_est)
    try:
        physical_vmem = int(pltpu.get_tpu_info().vmem_capacity_bytes)
    except Exception:
        physical_vmem = 64 << 20                              # v7x worst case
    cap = max(int(0.55 * physical_vmem), 24 << 20)
    vmem_limit = int(min(max(int(1.25 * est) + (4 << 20), 16 << 20), cap))

    # ---- pass 1: Gram statistics (per-core partials, combined below) -------
    x_spec_p1 = pl.BlockSpec((1, cin_p, s_len),
                             lambda c, j: (c * n_per + j, 0, 0))
    g_spec = pl.BlockSpec((1, cin_p, cin_p), lambda c, j: (c, 0, 0))
    sv_spec = pl.BlockSpec((1, cin_p, 1), lambda c, j: (c, 0, 0))

    g_parts, s_parts = pl.pallas_call(
        functools.partial(_stats_kernel, compute_dtype=compute_dtype),
        out_shape=(jax.ShapeDtypeStruct((num_splits, cin_p, cin_p), jnp.float32),
                   jax.ShapeDtypeStruct((num_splits, cin_p, 1), jnp.float32)),
        grid=(num_splits, n_per),
        in_specs=[x_spec_p1],
        out_specs=(g_spec, sv_spec),
        compiler_params=pltpu.CompilerParams(
            dimension_semantics=("parallel", "arbitrary"),
            vmem_limit_bytes=vmem_limit),
    )(x_flat)

    # Fold the Gram statistics into BN scale/shift (tiny wrapper-side math).
    g = jnp.sum(g_parts, axis=0)                             # (Cin_p, Cin_p)
    sv = jnp.sum(s_parts, axis=0)                            # (Cin_p, 1)
    w32 = w_pad.astype(jnp.float32)                          # (Cout_p, Cin_p)
    sum_y = w32 @ sv                                         # (Cout_p, 1)
    sumsq_y = jnp.sum((w32 @ g) * w32, axis=1, keepdims=True)
    inv_m = 1.0 / float(m)
    mean = sum_y * inv_m
    var = jnp.maximum(sumsq_y * inv_m - mean * mean, 0.0)    # biased, train mode
    inv_std = jax.lax.rsqrt(var + eps)
    scale = gamma_pad * inv_std                              # (Cout_p, 1)
    shift = beta_pad - mean * scale                          # (Cout_p, 1)

    # ---- pass 2: recompute conv + folded BN affine, write NCHW directly ----
    x_spec_p2 = pl.BlockSpec((1, cin_p, s_len), lambda i: (i, 0, 0))
    w_spec = pl.BlockSpec((cout_p, cin_p), lambda i: (0, 0))    # constant index
    vec_spec = pl.BlockSpec((cout_p, 1), lambda i: (0, 0))      # -> no re-DMA
    out_spec = pl.BlockSpec((1, cout_p, s_len), lambda i: (i, 0, 0))

    out_flat = pl.pallas_call(
        functools.partial(_normalize_kernel, compute_dtype=compute_dtype),
        out_shape=jax.ShapeDtypeStruct((n, cout_p, s_len), out_dtype),
        grid=(n,),
        in_specs=[x_spec_p2, w_spec, vec_spec, vec_spec],
        out_specs=out_spec,
        compiler_params=pltpu.CompilerParams(
            dimension_semantics=("parallel",),
            vmem_limit_bytes=vmem_limit),
    )(x_flat, w_pad, scale, shift)

    # Free reshape back to NCHW; channel slice is a no-op when Cout_p == Cout.
    out = out_flat[:, :cout, :].reshape(n, cout, ho, wo)
    return out


def _reference(x_nchw, conv_w, bn_gamma, bn_beta, *, stride, eps=1e-5):
    # Pure-JAX reference: strided 1x1 conv + training-mode BatchNorm2d.
    y = jax.lax.conv_general_dilated(
        x_nchw, conv_w, window_strides=(stride, stride), padding="VALID",
        dimension_numbers=("NCHW", "OIHW", "NCHW"))
    mean = y.mean(axis=(0, 2, 3), keepdims=True)
    var = ((y - mean) ** 2).mean(axis=(0, 2, 3), keepdims=True)
    return (y - mean) / jnp.sqrt(var + eps) * bn_gamma.reshape(1, -1, 1, 1) \
        + bn_beta.reshape(1, -1, 1, 1)


if __name__ == "__main__":
    # Small shapes consistent with a ResNet downsample branch.
    N, C_IN, C_OUT, H, W, STRIDE = 2, 4, 8, 16, 16, 2

    key = jax.random.PRNGKey(0)
    k_x, k_w, k_g, k_b = jax.random.split(key, 4)
    x = jax.random.normal(k_x, (N, C_IN, H, W), dtype=jnp.float32)
    conv_w = 0.1 * jax.random.normal(k_w, (C_OUT, C_IN, 1, 1), dtype=jnp.float32)
    bn_gamma = 1.0 + 0.05 * jax.random.normal(k_g, (C_OUT,), dtype=jnp.float32)
    bn_beta = 0.05 * jax.random.normal(k_b, (C_OUT,), dtype=jnp.float32)

    # --- f32 compute path: bit-accurate PyTorch semantics -------------------
    out_f32 = downsample_branch(x, conv_w, bn_gamma, bn_beta, stride=STRIDE,
                                compute_dtype=jnp.float32)
    out_f32 = jax.block_until_ready(out_f32)
    ref = _reference(x, conv_w, bn_gamma, bn_beta, stride=STRIDE)
    np.testing.assert_allclose(np.asarray(out_f32), np.asarray(ref),
                               rtol=1e-4, atol=1e-4)

    # --- default bf16 compute path (inputs quantized in-kernel) -------------
    out_bf16 = downsample_branch(x, conv_w, bn_gamma, bn_beta, stride=STRIDE)
    out_bf16 = jax.block_until_ready(out_bf16)
    x_q = x.astype(jnp.bfloat16).astype(jnp.float32)
    w_q = conv_w.astype(jnp.bfloat16).astype(jnp.float32)
    ref_q = _reference(x_q, w_q, bn_gamma, bn_beta, stride=STRIDE)
    np.testing.assert_allclose(np.asarray(out_bf16), np.asarray(ref_q),
                               rtol=2e-4, atol=2e-4)

    # --- odd batch (single-core pass-1 path), padded Cin, larger spatial ----
    N2, C_IN2, C_OUT2, H2, W2 = 3, 8, 16, 48, 48
    k_x2, k_w2, k_g2, k_b2 = jax.random.split(jax.random.PRNGKey(1), 4)
    x2 = jax.random.normal(k_x2, (N2, C_IN2, H2, W2), dtype=jnp.float32)
    conv_w2 = 0.1 * jax.random.normal(k_w2, (C_OUT2, C_IN2, 1, 1), dtype=jnp.float32)
    g2 = 1.0 + 0.05 * jax.random.normal(k_g2, (C_OUT2,), dtype=jnp.float32)
    b2 = 0.05 * jax.random.normal(k_b2, (C_OUT2,), dtype=jnp.float32)
    out2 = jax.block_until_ready(
        downsample_branch(x2, conv_w2, g2, b2, stride=STRIDE))
    ref2 = _reference(x2.astype(jnp.bfloat16).astype(jnp.float32),
                      conv_w2.astype(jnp.bfloat16).astype(jnp.float32),
                      g2, b2, stride=STRIDE)
    np.testing.assert_allclose(np.asarray(out2), np.asarray(ref2),
                               rtol=2e-4, atol=2e-4)

    # --- stride=1 branch (e.g. ResNet layer1 downsample) --------------------
    x3 = jax.random.normal(jax.random.PRNGKey(2), (2, 4, 8, 8), dtype=jnp.float32)
    out3 = jax.block_until_ready(
        downsample_branch(x3, conv_w, bn_gamma, bn_beta, stride=1))
    ref3 = _reference(x3.astype(jnp.bfloat16).astype(jnp.float32),
                      w_q, bn_gamma, bn_beta, stride=1)
    np.testing.assert_allclose(np.asarray(out3), np.asarray(ref3),
                               rtol=2e-4, atol=2e-4)

    print("KERNEL_OK")
</pallas_src>

<mosaic_0001>
module attributes {stable_mosaic.version = 11 : i64} {
  func.func @_stats_kernel(%arg0: i32, %arg1: i32, %arg2: memref<1x8x64xf32, #tpu.memory_space<vmem>>, %arg3: memref<1x8x8xf32, #tpu.memory_space<vmem>>, %arg4: memref<1x8x1xf32, #tpu.memory_space<vmem>>) attributes {dimension_semantics = [#tpu.dimension_semantics<parallel>, #tpu.dimension_semantics<arbitrary>], iteration_bounds = array<i64: 2, 1>, scalar_prefetch = 0 : i64, scratch_operands = 0 : i64, tpu.core_type = #tpu.core_type<tc>, window_params = [{transform_indices = @transform_0, window_bounds = array<i64: 1, 8, 64>}, {transform_indices = @transform_1, window_bounds = array<i64: 1, 8, 8>}, {transform_indices = @transform_2, window_bounds = array<i64: 1, 8, 1>}]} {
    %c0_i32 = arith.constant 0 : i32
    %0 = arith.cmpi eq, %arg1, %c0_i32 : i32
    %1 = arith.extui %0 : i1 to i32
    %c0_i32_0 = arith.constant 0 : i32
    %2 = arith.cmpi ne, %1, %c0_i32_0 : i32
    scf.if %2 {
      %cst_16 = arith.constant 0.000000e+00 : f32
      %20 = vector.broadcast %cst_16 : f32 to vector<1x8x8xf32>
      %c0_17 = arith.constant 0 : index
      %c0_18 = arith.constant 0 : index
      %c0_19 = arith.constant 0 : index
      %21 = vector.load %arg3[%c0_17, %c0_18, %c0_19] : memref<1x8x8xf32, #tpu.memory_space<vmem>>, vector<1x8x8xf32>
      tpu.vector_store %arg3[%c0_17, %c0_18, %c0_19], %20 {strides = array<i32>} : memref<1x8x8xf32, #tpu.memory_space<vmem>>, vector<1x8x8xf32>,
      %cst_20 = arith.constant 0.000000e+00 : f32
      %22 = vector.broadcast %cst_20 : f32 to vector<1x8x1xf32>
      %c0_21 = arith.constant 0 : index
      %c0_22 = arith.constant 0 : index
      %c0_23 = arith.constant 0 : index
      %23 = vector.load %arg4[%c0_21, %c0_22, %c0_23] : memref<1x8x1xf32, #tpu.memory_space<vmem>>, vector<1x8x1xf32>
      tpu.vector_store %arg4[%c0_21, %c0_22, %c0_23], %22 {strides = array<i32>} : memref<1x8x1xf32, #tpu.memory_space<vmem>>, vector<1x8x1xf32>,
    } else {
    }
    %c0 = arith.constant 0 : index
    %c0_1 = arith.constant 0 : index
    %c0_2 = arith.constant 0 : index
    %3 = vector.load %arg2[%c0, %c0_1, %c0_2] : memref<1x8x64xf32, #tpu.memory_space<vmem>>, vector<1x8x64xf32>
    %4 = vector.shape_cast %3 : vector<1x8x64xf32> to vector<8x64xf32>
    %c0_3 = arith.constant 0 : index
    %c0_4 = arith.constant 0 : index
    %c0_5 = arith.constant 0 : index
    %5 = vector.load %arg3[%c0_3, %c0_4, %c0_5] : memref<1x8x8xf32, #tpu.memory_space<vmem>>, vector<1x8x8xf32>
    %6 = vector.shape_cast %5 : vector<1x8x8xf32> to vector<8x8xf32>
    %cst = arith.constant dense<0.000000e+00> : vector<8x8xf32>
    %7 = tpu.matmul %4, %4, %cst {dimension_numbers = #tpu.dot_dimension_numbers<[1], [1], [0], [0], [0, 0, 1, 0], [], []>} : vector<8x64xf32>, vector<8x64xf32>, vector<8x8xf32> -> vector<8x8xf32>
    %8 = arith.addf %6, %7 : vector<8x8xf32>
    %c0_6 = arith.constant 0 : index
    %c0_7 = arith.constant 0 : index
    %c0_8 = arith.constant 0 : index
    %9 = vector.load %arg3[%c0_6, %c0_7, %c0_8] : memref<1x8x8xf32, #tpu.memory_space<vmem>>, vector<1x8x8xf32>
    %10 = vector.shape_cast %9 : vector<1x8x8xf32> to vector<8x8xf32>
    %11 = vector.shape_cast %8 : vector<8x8xf32> to vector<1x8x8xf32>
    tpu.vector_store %arg3[%c0_6, %c0_7, %c0_8], %11 {strides = array<i32>} : memref<1x8x8xf32, #tpu.memory_space<vmem>>, vector<1x8x8xf32>,
    %c0_9 = arith.constant 0 : index
    %c0_10 = arith.constant 0 : index
    %c0_11 = arith.constant 0 : index
    %12 = vector.load %arg4[%c0_9, %c0_10, %c0_11] : memref<1x8x1xf32, #tpu.memory_space<vmem>>, vector<1x8x1xf32>
    %13 = vector.shape_cast %12 : vector<1x8x1xf32> to vector<8x1xf32>
    %cst_12 = arith.constant dense<0.000000e+00> : vector<8xf32>
    %14 = vector.multi_reduction <add>, %4, %cst_12 [1] : vector<8x64xf32> to vector<8xf32>
    %15 = vector.shape_cast %14 : vector<8xf32> to vector<8x1xf32>
    %16 = arith.addf %13, %15 : vector<8x1xf32>
    %c0_13 = arith.constant 0 : index
    %c0_14 = arith.constant 0 : index
    %c0_15 = arith.constant 0 : index
    %17 = vector.load %arg4[%c0_13, %c0_14, %c0_15] : memref<1x8x1xf32, #tpu.memory_space<vmem>>, vector<1x8x1xf32>
    %18 = vector.shape_cast %17 : vector<1x8x1xf32> to vector<8x1xf32>
    %19 = vector.shape_cast %16 : vector<8x1xf32> to vector<1x8x1xf32>
    tpu.vector_store %arg4[%c0_13, %c0_14, %c0_15], %19 {strides = array<i32>} : memref<1x8x1xf32, #tpu.memory_space<vmem>>, vector<1x8x1xf32>,
    return
  }
  func.func @transform_0(%arg0: i32, %arg1: i32) -> (i32, i32, i32) {
    %c1_i32 = arith.constant 1 : i32
    %0 = arith.muli %arg0, %c1_i32 : i32
    %1 = arith.addi %0, %arg1 : i32
    %c0_i32 = arith.constant 0 : i32
    %c0_i32_0 = arith.constant 0 : i32
    %c0_i32_1 = arith.constant 0 : i32
    return %1, %c0_i32, %c0_i32_0 : i32, i32, i32
  }
  func.func @transform_1(%arg0: i32, %arg1: i32) -> (i32, i32, i32) {
    %c0_i32 = arith.constant 0 : i32
    %c0_i32_0 = arith.constant 0 : i32
    %c0_i32_1 = arith.constant 0 : i32
    return %arg0, %c0_i32, %c0_i32_0 : i32, i32, i32
  }
  func.func @transform_2(%arg0: i32, %arg1: i32) -> (i32, i32, i32) {
    %c0_i32 = arith.constant 0 : i32
    %c0_i32_0 = arith.constant 0 : i32
    %c0_i32_1 = arith.constant 0 : i32
    return %arg0, %c0_i32, %c0_i32_0 : i32, i32, i32
  }
}

</mosaic_0001>

<bundles_post_ra>
// kernel: tpu_custom_call.1
= control target key start
LH: loop header
LB: loop body
LE: loop exit
PB: predicated region body
PF: predicated region fallthrough
CT: control target
= control target key end

     0   :  { %8 = vsyncpa [#allocation3], 0  ;;  %s694_s0 = inlined_call_operand.hbm [shape: f32[2,8,64], index: 0, kind: input, shape index: {}]   ;;  %s695_s1 = inlined_call_operand.hbm [shape: f32[2,8,8], index: 1, kind: output, shape index: {0}]   ;;  %s696_s2 = inlined_call_operand.vmem [shape: f32[2,8,1], index: 2, kind: output, shape index: {1}]  }
   0x1   :  { %10 = vsyncpa [#allocation3 + $0x1], 0 }
   0x2   :  { %11 = vsyncpa [#allocation4], 0 }
   0x3   :  { %13 = vsyncpa [#allocation4 + $0x1], 0  ;;  %s567_s9 = smov 0   ;;  %s569_s10 = smov 0  }
   0x4   :  { %s571_s11 = smov 0   ;;  %s573_s12 = smov 0  }
   0x5   :  { %s575_s13 = smov 0   ;;  %s577_s14 = smov 0  }
   0x6 LB: > { %s358_s15 = sadd.s32 4294967295, %s549_s14   ;;  %s359_s16 = sadd.s32 4294967294, %s549_s14   ;;  %s549_s14 = sphi %s577_s14, %s19_s14   ;;  %s545_s13 = sphi %s575_s13, %s705_s13   ;;  %s541_s12 = sphi %s573_s12, %s704_s12   ;;  %s537_s11 = sphi %s571_s11, %s703_s11   ;;  %s533_s10 = sphi %s569_s10, %s702_s10   ;;  %s529_s9 = sphi %s567_s9, %s701_s9  }
   0x7   : > { %s31_s17 = sadd.s32 1, %s545_s13  ;;  %s40_s18 = sadd.s32 1, %s537_s11 }
   0x8   : > { %p33_p0 = scmp.ge.s32.totalorder %s31_s17, 2  ;;  %p47_p1 = scmp.ne.s32.totalorder %s537_s11, %s533_s10 }
   0x9   : > { %p48_p2 = scmp.eq.s32.totalorder %s549_s14, 0  ;;  %p53_p3 = scmp.ne.s32.totalorder %s533_s10, %s529_s9 }
   0xa   : > { %s707_s17 = smov (%p33_p0, %s31_s17), 0  ;;  %p54_p5 = scmp.eq.s32.totalorder %s358_s15, 0 }
   0xb   : > { %p608_p4 = por %p48_p2, %p47_p1  ;;  %s37_s20 = ssub.s32 %s545_s13, %s707_s17 }
   0xc   : > { %p77_p6 = scmp.eq.s32.totalorder %s358_s15, 1  ;;  %p38_p7 = scmp.eq.s32.totalorder %s37_s20, 0 }
   0xd   : > { %p614_p8 = por %p54_p5, %p53_p3  ;;  %p83_p10 = scmp.eq.s32.totalorder %s359_s16, 1 }
   0xe   : > { %p618_p9 = por %p77_p6, %p47_p1  ;;  %p361_p12 = scmp.ge.s32.totalorder %s549_s14, 2 }
   0xf   : > { %s623_s23 = scalar_select %p38_p7, %s537_s11, %s40_s18  }
  0x10   : > { %p625_p11 = por %p83_p10, %p53_p3  ;;  %p386_p13 = scmp.lt.s32.totalorder %s549_s14, 2 }
  0x11   : > { %s129_s25 = sand.u32 1, %s537_s11   ;;  %s363_s27 = sshll.u32 %s545_s13, 3 }
  0x12   : > { %s362_s26 = sshll.u32 %s129_s25, 3  ;;  %s138_s30 = scalar_lea.hbm %s694_s0, %s363_s27 }
  0x13   : > { %s133_s3 = scalar_lea.vmem [#allocation2], %s362_s26  ;;  %s140_s5 = sshll.u32 %s138_s30, 4  ;;  %s141_s5 = int_to_ptr.hbm [resolvable:$true] %s140_s5 }
  0x14   : > { %s142_s4 = sshll.u32 %s133_s3, 4  ;;  %p379_p0 = pnand %p386_p13, %p608_p4  ;;  %s143_s4 = int_to_ptr.vmem [resolvable:$true] %s142_s4 }
  0x15   : > { %p364_p1 = scmp.ge.s32.totalorder %s549_s14, 1  ;;  %p147_p2 = scmp.lt.s32.totalorder %s549_s14, 3 }
  0x16   : > { %s130_s6 = scalar_lea.sflag [#allocation3], %s129_s25 }
  0x17   : > { %381 = dma.hbm_to_vmem [thread:$0]  (!%p379_p0), %s141_s5, 128, %s143_s4, %s130_s6  }
  0x18   : > { %p148_p3 = pnand %p364_p1, %p147_p2 }
  0x19   : > { %s641_s7 = sand.u32 (!%p148_p3), 1, %s533_s10  }
  0x1a   : > { %151 = sbr.rel (%p148_p3) target bundleno = 167 (0xa7), region = 24  ;;  %s365_s8 = sshll.u32 (!%p148_p3), %s641_s7, 3 }
  0x1b   : > { %s154_s15 = scalar_lea.sflag (!%p148_p3), [#allocation3], %s641_s7  ;;  %s157_s16 = scalar_lea.vmem (!%p148_p3), [#allocation2], %s365_s8 }
  0x1f   : > { %520 = dma.done.wait (%p614_p8), %s154_s15, 128  }
  0x20   : > { %522 = vsyncadd (%p614_p8), %s154_s15, 4294967168  ;;  %vm192_vm0 = vcmask 64512   ;;  %s176_s18 = scalar_lea.vmem [#allocation5], %s365_s8  ;;  %v551_v0 = vmov 0.0   ;;  %vm198_vm1 = vcmask 523264   ;;  %v196_v1 = vld [vmem:[%s157_s16] sm:$0xff] }
  0x21   : > { %193 = vst.msk [vmem:[%s176_s18] sm:$0xff] %vm192_vm0, %v551_v0  ;;  %368 = vmatpush.xpose.msk.msra.mxu0 %vm198_vm1, %v196_v1  ;;  %v226_v2 = vsel %vm198_vm1, %v196_v1, 0.0  ;;  %p184_p4 = scmp.lt.s32.totalorder %s541_s12, 1  ;;  %vm194_vm2 = vcmask 7168   ;;  %s371_s27 = sshll.u32 %s541_s12, 3 }
  0x22   : > { %227 = vadd.xlane.f32.xlu0 %v226_v2  ;;  %s247_s30 = scalar_lea.hbm %s695_s1, %s371_s27  ;;  %s249_s3 = sshll.u32 %s176_s18, 4  ;;  %s250_s3 = int_to_ptr.vmem [resolvable:$true] %s249_s3 }
  0x23   : > { %s185_s19 = scalar_select %p184_p4, %s541_s12, 1 }
  0x24   : > { %369 = vmatmul.msk.f32.vlgmr.msra.gmra.mxu0 %vm198_vm1, %v196_v1  ;;  %s251_s4 = sshll.u32 %s247_s30, 4  ;;  %s233_s5 = scalar_lea.sflag [#allocation4], %s641_s7  ;;  %s252_s4 = int_to_ptr.hbm [resolvable:$true] %s251_s4 }
  0x25   : > { %s367_s20 = sshll.u32 %s185_s19, 3  ;;  %s481_s6 = sshra.s32 %s252_s4, 4  ;;  %s482_s6 = int_to_ptr.hbm [resolvable:$true] %s481_s6 }
  0x26   : > { %s187_s26 = scalar_lea.vmem %s696_s2, %s367_s20  ;;  %s483_s8 = scalar_lea.hbm %s482_s6, 8 }
  0x27   : > { %195 = vst.msk [vmem:[%s187_s26] sm:$0xff] %vm194_vm2, %v551_v0  ;;  %p484_p5 = scmp.ne.s32.totalorder %s482_s6, %s483_s8  ;;  %s487_s16 = scalar_lea.hbm %s695_s1, 16 }
  0x28   : > { %v197_v6 = vld [vmem:[%s176_s18] sm:$0xff]  ;;  %p488_p8 = scmp.lt.s32.totalorder %s482_s6, %s695_s1  ;;  %p489_p10 = scmp.lt.s32.totalorder %s487_s16, %s483_s8 }
  0x29   : > { %p485_p6 = pnand %p484_p5, %p618_p9 }
  0x2a   : > { %p490_p13 = por %p489_p10, %p488_p8 }
  0x2b   : > { %p486_p7 = pneg %p485_p6 }
  0x2d   : > { %p491_p0 = pnand %p490_p13, %p486_p7 }
  0x2e   : > { %v225_v3 = vld [vmem:[%s187_s26] sm:$0xff] }
  0x95   : > { %v228_v4 = vpop.xlane.xlu0 %227 }
  0x96   : > { %v229_v5 = vadd.f32 %v228_v4, %v225_v3 }
  0x98   : > { %231 = vst.msk [vmem:[%s187_s26] sm:$0xff] %vm194_vm2, %v229_v5 }
  0xa1   : > { %v219_v7 = vpop.f32.mrf.mxu0 }
  0xa2   : > { %v222_v8 = vadd.f32 %v219_v7, %v197_v6 }
  0xa4   : > { %224 = vst.msk [vmem:[%s176_s18] sm:$0xff] %vm192_vm0, %v222_v8 }
  0xa5   : > { %494 = shalt.err (!%p491_p0)
}
  0xa6   : > { %376 = dma.vmem_to_hbm [thread:$0]  (%p618_p9), %s250_s3, 128, %s252_s4, %s233_s5  }
  0xa7 PF: > { %s266_s7 = sand.u32 1, %s529_s9   ;;  %p383_p1 = pnand %p361_p12, %p625_p11 }
  0xa8   : > { %s267_s18 = scalar_lea.sflag [#allocation4], %s266_s7 }
  0xa9   : > { %p384_p2 = pneg %p383_p1 }
  0xab   : > { %524 = dma.done.wait (%p384_p2), %s267_s18, 128  }
  0xac   : > { %526 = vsyncadd (%p384_p2), %s267_s18, 4294967168  ;;  %s19_s14 = sadd.s32 1, %s549_s14   ;;  %s701_s9 = smov %s533_s10 }
  0xad   : > { %p16_p3 = scmp.ge.s32.totalorder %s19_s14, 4   ;;  %s702_s10 = smov %s537_s11 }
  0xae   : > { %s703_s11 = smov %s623_s23  ;;  %s704_s12 = smov %s545_s13 }
  0xaf   : > { %s705_s13 = smov %s707_s17  ;;  %18 = sbr.rel (!%p16_p3) target bundleno = 6 (0x6), region = 85 }
  0xb4   :  { %280 = vsyncpa [#allocation3], 1 }
  0xb5   :  { %282 = vsyncpa [#allocation3 + $0x1], 1 }
  0xb6   :  { %283 = vsyncpa [#allocation4], 1 }
  0xb7   :  { %285 = vsyncpa [#allocation4 + $0x1], 1 }

</bundles_post_ra>
